<compile_context>
chip_gen: v5e
topology: v5e:2x2
jax: 0.10.0
libtpu: 0.0.40
codegen_flags: <defaults>
</compile_context>

<pallas_src>
import jax
import jax.numpy as jnp
from jax.experimental import pallas as pl
from jax.experimental.pallas import tpu as pltpu


def iwt_kernel(x_ref, q0_ref, q1_ref, o_ref):
    """x_ref: (1, 4, Rt, W) subband rows.  q0/q1: (W, 2W) bf16 scatter matrices
    with entries {0, 0.5}.  o_ref: (1, Rt, 4W) f32 (even output rows | odd rows)."""
    x1 = x_ref[0, 0].astype(jnp.float32)
    x2 = x_ref[0, 1].astype(jnp.float32)
    x3 = x_ref[0, 2].astype(jnp.float32)
    x4 = x_ref[0, 3].astype(jnp.float32)

    # Exact f32 Haar combine on the VPU (the /2 is folded into q0/q1 = 0.5).
    tp = x1 + x2
    tm = x1 - x2
    up = x3 + x4
    um = x3 - x4
    c00 = tm - um      # -> rows 2i,   cols 2j      (x1 - x2 - x3 + x4)
    c01 = tp - up      # -> rows 2i,   cols 2j + 1  (x1 + x2 - x3 - x4)
    c10 = tm + um      # -> rows 2i+1, cols 2j      (x1 - x2 + x3 - x4)
    c11 = tp + up      # -> rows 2i+1, cols 2j + 1  (x1 + x2 + x3 + x4)

    q0 = q0_ref[...]
    q1 = q1_ref[...]

    def scatter(c, q):
        # Lane scatter on the MXU, exact to ~2^-18: c == hi + lo with hi, lo in
        # bf16 (lo only loses bits below 2^-18 * |c|); q has a single 0.5 per
        # column so each single-pass bf16 matmul is a pure (exact) placement.
        hi = c.astype(jnp.bfloat16)
        lo = (c - hi.astype(jnp.float32)).astype(jnp.bfloat16)
        return (jnp.dot(hi, q, preferred_element_type=jnp.float32)
                + jnp.dot(lo, q, preferred_element_type=jnp.float32))

    half = o_ref.shape[-1] // 2
    o_ref[0, :, :half] = (scatter(c00, q0) + scatter(c01, q1)).astype(o_ref.dtype)
    o_ref[0, :, half:] = (scatter(c10, q0) + scatter(c11, q1)).astype(o_ref.dtype)


def _plan_tiles(n, ch, w):
    """Pick the row-tile size and a matching VMEM limit.

    The in+out block pair (f32) is capped at ~12 MiB so the double-buffered
    residency (plus the two small bf16 scatter matrices) stays well under v7x's
    64 MiB VMEM while still being large enough to sit near the HBM roofline on
    v5e / v6e.  No divisor constraints: the grid uses cdiv and the padded tail
    rows only ever produce discarded output rows.
    """
    pair_budget = 12 << 20                     # in + out bytes per step (f32)
    bytes_per_row = 32 * w                     # 4*W in + 4*W out, f32
    cap = max(8, (pair_budget // bytes_per_row) // 8 * 8)
    if ch <= cap:
        rt = ch if ch < 8 else (ch // 8) * 8   # tiny: full dim; else 8-aligned
    else:
        rt = cap
    # v7x megacore: make sure there are at least 2 grid steps when possible.
    if n * pl.cdiv(ch, rt) < 2 and rt > 8:
        rt = max(8, (((rt + 1) // 2) + 7) // 8 * 8)

    q_bytes = 2 * (w * 2 * w * 2)              # two (W, 2W) bf16 matrices
    need = 2 * (bytes_per_row * rt) + 2 * q_bytes + (2 << 20)
    vmem_limit = int(min(max(need, 16 << 20), 48 << 20))
    return rt, vmem_limit


@jax.jit
def iwt_forward(x):
    """Pallas TPU forward of IWT: (N, 4C, H, W) -> (N, C, 2H, 2W), float32."""
    n, c_in, h, w = x.shape
    if c_in % 4 != 0:
        raise ValueError("IWT input channels must be a multiple of 4")
    c = c_in // 4
    ch = c * h
    x4 = x.reshape(n, 4, ch, w)                # free (metadata-only) reshape

    # Scatter matrices: q0[k, 2k] = 0.5, q1[k, 2k+1] = 0.5 (exact in bf16).
    j = jnp.arange(w, dtype=jnp.int32)[:, None]
    col = jnp.arange(2 * w, dtype=jnp.int32)[None, :]
    q0 = jnp.where(col == 2 * j, 0.5, 0.0).astype(jnp.bfloat16)
    q1 = jnp.where(col == 2 * j + 1, 0.5, 0.0).astype(jnp.bfloat16)

    rt, vmem_limit = _plan_tiles(n, ch, w)
    grid = (n, pl.cdiv(ch, rt))

    out2 = pl.pallas_call(
        iwt_kernel,
        grid=grid,
        in_specs=[
            pl.BlockSpec((1, 4, rt, w), lambda i, t: (i, 0, t, 0)),
            pl.BlockSpec((w, 2 * w), lambda i, t: (0, 0)),   # constant block ->
            pl.BlockSpec((w, 2 * w), lambda i, t: (0, 0)),   # fetched once
        ],
        out_specs=pl.BlockSpec((1, rt, 4 * w), lambda i, t: (i, t, 0)),
        out_shape=jax.ShapeDtypeStruct((n, ch, 4 * w), jnp.float32),
        compiler_params=pltpu.CompilerParams(
            dimension_semantics=("parallel", "parallel"),
            vmem_limit_bytes=vmem_limit),
    )(x4, q0, q1)

    # (N, C*H, 4W) -> (N, C, 2H, 2W): row r = c*H + i, lane a*2W + 2j + b is
    # exactly h[n, c, 2i+a, 2j+b]; pure metadata reshape (no data movement).
    return out2.reshape(n, c, 2 * h, 2 * w)


def iwt_reference(x):
    """Plain-JAX reference matching the PyTorch iwt_init."""
    n, c_in, h, w = x.shape
    c = c_in // 4
    x = x.astype(jnp.float32)
    x1 = x[:, 0 * c:1 * c] / 2
    x2 = x[:, 1 * c:2 * c] / 2
    x3 = x[:, 2 * c:3 * c] / 2
    x4 = x[:, 3 * c:4 * c] / 2
    out = jnp.zeros((n, c, 2 * h, 2 * w), jnp.float32)
    out = out.at[:, :, 0::2, 0::2].set(x1 - x2 - x3 + x4)
    out = out.at[:, :, 1::2, 0::2].set(x1 - x2 + x3 - x4)
    out = out.at[:, :, 0::2, 1::2].set(x1 + x2 - x3 - x4)
    out = out.at[:, :, 1::2, 1::2].set(x1 + x2 + x3 + x4)
    return out


if __name__ == "__main__":
    key = jax.random.PRNGKey(0)
    n, c_in, h, w = 2, 4, 16, 16
    x = jax.random.normal(key, (n, c_in, h, w), jnp.float32)

    out = jax.block_until_ready(iwt_forward(x))

    ref = iwt_reference(x)
    assert out.shape == (n, c_in // 4, 2 * h, 2 * w)
    max_err = float(jnp.max(jnp.abs(out - ref)))
    assert jnp.allclose(out, ref, atol=1e-4, rtol=1e-4), max_err

    print("KERNEL_OK")
</pallas_src>

<mosaic_0001>
module attributes {stable_mosaic.version = 11 : i64} {
  func.func @iwt_kernel(%arg0: i32, %arg1: i32, %arg2: memref<1x4x16x16xf32, #tpu.memory_space<vmem>>, %arg3: memref<16x32xbf16, #tpu.memory_space<vmem>>, %arg4: memref<16x32xbf16, #tpu.memory_space<vmem>>, %arg5: memref<1x16x64xf32, #tpu.memory_space<vmem>>) attributes {dimension_semantics = [#tpu.dimension_semantics<parallel>, #tpu.dimension_semantics<parallel>], iteration_bounds = array<i64: 2, 1>, scalar_prefetch = 0 : i64, scratch_operands = 0 : i64, tpu.core_type = #tpu.core_type<tc>, window_params = [{transform_indices = @transform_0, window_bounds = array<i64: 1, 4, 16, 16>}, {pipeline_mode = #tpu.pipeline_mode<synchronous>, transform_indices = @transform_1, window_bounds = array<i64: 16, 32>}, {pipeline_mode = #tpu.pipeline_mode<synchronous>, transform_indices = @transform_2, window_bounds = array<i64: 16, 32>}, {transform_indices = @transform_3, window_bounds = array<i64: 1, 16, 64>}]} {
    %c0 = arith.constant 0 : index
    %c0_0 = arith.constant 0 : index
    %c0_1 = arith.constant 0 : index
    %c0_2 = arith.constant 0 : index
    %0 = vector.load %arg2[%c0, %c0_0, %c0_1, %c0_2] : memref<1x4x16x16xf32, #tpu.memory_space<vmem>>, vector<1x1x16x16xf32>
    %1 = vector.shape_cast %0 : vector<1x1x16x16xf32> to vector<16x16xf32>
    %c0_3 = arith.constant 0 : index
    %c1 = arith.constant 1 : index
    %c0_4 = arith.constant 0 : index
    %c0_5 = arith.constant 0 : index
    %2 = vector.load %arg2[%c0_3, %c1, %c0_4, %c0_5] : memref<1x4x16x16xf32, #tpu.memory_space<vmem>>, vector<1x1x16x16xf32>
    %3 = vector.shape_cast %2 : vector<1x1x16x16xf32> to vector<16x16xf32>
    %c0_6 = arith.constant 0 : index
    %c2 = arith.constant 2 : index
    %c0_7 = arith.constant 0 : index
    %c0_8 = arith.constant 0 : index
    %4 = vector.load %arg2[%c0_6, %c2, %c0_7, %c0_8] : memref<1x4x16x16xf32, #tpu.memory_space<vmem>>, vector<1x1x16x16xf32>
    %5 = vector.shape_cast %4 : vector<1x1x16x16xf32> to vector<16x16xf32>
    %c0_9 = arith.constant 0 : index
    %c3 = arith.constant 3 : index
    %c0_10 = arith.constant 0 : index
    %c0_11 = arith.constant 0 : index
    %6 = vector.load %arg2[%c0_9, %c3, %c0_10, %c0_11] : memref<1x4x16x16xf32, #tpu.memory_space<vmem>>, vector<1x1x16x16xf32>
    %7 = vector.shape_cast %6 : vector<1x1x16x16xf32> to vector<16x16xf32>
    %8 = arith.addf %1, %3 : vector<16x16xf32>
    %9 = arith.subf %1, %3 : vector<16x16xf32>
    %10 = arith.addf %5, %7 : vector<16x16xf32>
    %11 = arith.subf %5, %7 : vector<16x16xf32>
    %12 = arith.subf %9, %11 : vector<16x16xf32>
    %13 = arith.subf %8, %10 : vector<16x16xf32>
    %14 = arith.addf %9, %11 : vector<16x16xf32>
    %15 = arith.addf %8, %10 : vector<16x16xf32>
    %c0_12 = arith.constant 0 : index
    %c0_13 = arith.constant 0 : index
    %16 = vector.load %arg3[%c0_12, %c0_13] : memref<16x32xbf16, #tpu.memory_space<vmem>>, vector<16x32xbf16>
    %c0_14 = arith.constant 0 : index
    %c0_15 = arith.constant 0 : index
    %17 = vector.load %arg4[%c0_14, %c0_15] : memref<16x32xbf16, #tpu.memory_space<vmem>>, vector<16x32xbf16>
    %18 = arith.truncf %12 : vector<16x16xf32> to vector<16x16xbf16>
    %19 = arith.extf %18 : vector<16x16xbf16> to vector<16x16xf32>
    %20 = arith.subf %12, %19 : vector<16x16xf32>
    %21 = arith.truncf %20 : vector<16x16xf32> to vector<16x16xbf16>
    %cst = arith.constant dense<0.000000e+00> : vector<16x32xf32>
    %22 = tpu.matmul %18, %16, %cst {dimension_numbers = #tpu.dot_dimension_numbers<[1], [0], [0], [1], [0, 0, 1, 1], [], []>} : vector<16x16xbf16>, vector<16x32xbf16>, vector<16x32xf32> -> vector<16x32xf32>
    %cst_16 = arith.constant dense<0.000000e+00> : vector<16x32xf32>
    %23 = tpu.matmul %21, %16, %cst_16 {dimension_numbers = #tpu.dot_dimension_numbers<[1], [0], [0], [1], [0, 0, 1, 1], [], []>} : vector<16x16xbf16>, vector<16x32xbf16>, vector<16x32xf32> -> vector<16x32xf32>
    %24 = arith.addf %22, %23 : vector<16x32xf32>
    %25 = arith.truncf %13 : vector<16x16xf32> to vector<16x16xbf16>
    %26 = arith.extf %25 : vector<16x16xbf16> to vector<16x16xf32>
    %27 = arith.subf %13, %26 : vector<16x16xf32>
    %28 = arith.truncf %27 : vector<16x16xf32> to vector<16x16xbf16>
    %cst_17 = arith.constant dense<0.000000e+00> : vector<16x32xf32>
    %29 = tpu.matmul %25, %17, %cst_17 {dimension_numbers = #tpu.dot_dimension_numbers<[1], [0], [0], [1], [0, 0, 1, 1], [], []>} : vector<16x16xbf16>, vector<16x32xbf16>, vector<16x32xf32> -> vector<16x32xf32>
    %cst_18 = arith.constant dense<0.000000e+00> : vector<16x32xf32>
    %30 = tpu.matmul %28, %17, %cst_18 {dimension_numbers = #tpu.dot_dimension_numbers<[1], [0], [0], [1], [0, 0, 1, 1], [], []>} : vector<16x16xbf16>, vector<16x32xbf16>, vector<16x32xf32> -> vector<16x32xf32>
    %31 = arith.addf %29, %30 : vector<16x32xf32>
    %32 = arith.addf %24, %31 : vector<16x32xf32>
    %c0_19 = arith.constant 0 : index
    %c0_20 = arith.constant 0 : index
    %c0_21 = arith.constant 0 : index
    %33 = vector.load %arg5[%c0_19, %c0_20, %c0_21] : memref<1x16x64xf32, #tpu.memory_space<vmem>>, vector<1x16x32xf32>
    %34 = vector.shape_cast %33 : vector<1x16x32xf32> to vector<16x32xf32>
    %35 = vector.shape_cast %32 : vector<16x32xf32> to vector<1x16x32xf32>
    tpu.vector_store %arg5[%c0_19, %c0_20, %c0_21], %35 {strides = array<i32>} : memref<1x16x64xf32, #tpu.memory_space<vmem>>, vector<1x16x32xf32>,
    %36 = arith.truncf %14 : vector<16x16xf32> to vector<16x16xbf16>
    %37 = arith.extf %36 : vector<16x16xbf16> to vector<16x16xf32>
    %38 = arith.subf %14, %37 : vector<16x16xf32>
    %39 = arith.truncf %38 : vector<16x16xf32> to vector<16x16xbf16>
    %cst_22 = arith.constant dense<0.000000e+00> : vector<16x32xf32>
    %40 = tpu.matmul %36, %16, %cst_22 {dimension_numbers = #tpu.dot_dimension_numbers<[1], [0], [0], [1], [0, 0, 1, 1], [], []>} : vector<16x16xbf16>, vector<16x32xbf16>, vector<16x32xf32> -> vector<16x32xf32>
    %cst_23 = arith.constant dense<0.000000e+00> : vector<16x32xf32>
    %41 = tpu.matmul %39, %16, %cst_23 {dimension_numbers = #tpu.dot_dimension_numbers<[1], [0], [0], [1], [0, 0, 1, 1], [], []>} : vector<16x16xbf16>, vector<16x32xbf16>, vector<16x32xf32> -> vector<16x32xf32>
    %42 = arith.addf %40, %41 : vector<16x32xf32>
    %43 = arith.truncf %15 : vector<16x16xf32> to vector<16x16xbf16>
    %44 = arith.extf %43 : vector<16x16xbf16> to vector<16x16xf32>
    %45 = arith.subf %15, %44 : vector<16x16xf32>
    %46 = arith.truncf %45 : vector<16x16xf32> to vector<16x16xbf16>
    %cst_24 = arith.constant dense<0.000000e+00> : vector<16x32xf32>
    %47 = tpu.matmul %43, %17, %cst_24 {dimension_numbers = #tpu.dot_dimension_numbers<[1], [0], [0], [1], [0, 0, 1, 1], [], []>} : vector<16x16xbf16>, vector<16x32xbf16>, vector<16x32xf32> -> vector<16x32xf32>
    %cst_25 = arith.constant dense<0.000000e+00> : vector<16x32xf32>
    %48 = tpu.matmul %46, %17, %cst_25 {dimension_numbers = #tpu.dot_dimension_numbers<[1], [0], [0], [1], [0, 0, 1, 1], [], []>} : vector<16x16xbf16>, vector<16x32xbf16>, vector<16x32xf32> -> vector<16x32xf32>
    %49 = arith.addf %47, %48 : vector<16x32xf32>
    %50 = arith.addf %42, %49 : vector<16x32xf32>
    %c0_26 = arith.constant 0 : index
    %c0_27 = arith.constant 0 : index
    %c32 = arith.constant 32 : index
    %51 = vector.load %arg5[%c0_26, %c0_27, %c32] : memref<1x16x64xf32, #tpu.memory_space<vmem>>, vector<1x16x32xf32>
    %52 = vector.shape_cast %51 : vector<1x16x32xf32> to vector<16x32xf32>
    %53 = vector.shape_cast %50 : vector<16x32xf32> to vector<1x16x32xf32>
    tpu.vector_store %arg5[%c0_26, %c0_27, %c32], %53 {strides = array<i32>} : memref<1x16x64xf32, #tpu.memory_space<vmem>>, vector<1x16x32xf32>,
    return
  }
  func.func @transform_0(%arg0: i32, %arg1: i32) -> (i32, i32, i32, i32) {
    %c0_i32 = arith.constant 0 : i32
    %c0_i32_0 = arith.constant 0 : i32
    %c0_i32_1 = arith.constant 0 : i32
    return %arg0, %c0_i32, %arg1, %c0_i32_0 : i32, i32, i32, i32
  }
  func.func @transform_1(%arg0: i32, %arg1: i32) -> (i32, i32) {
    %c0_i32 = arith.constant 0 : i32
    %c0_i32_0 = arith.constant 0 : i32
    %c0_i32_1 = arith.constant 0 : i32
    return %c0_i32, %c0_i32_0 : i32, i32
  }
  func.func @transform_2(%arg0: i32, %arg1: i32) -> (i32, i32) {
    %c0_i32 = arith.constant 0 : i32
    %c0_i32_0 = arith.constant 0 : i32
    %c0_i32_1 = arith.constant 0 : i32
    return %c0_i32, %c0_i32_0 : i32, i32
  }
  func.func @transform_3(%arg0: i32, %arg1: i32) -> (i32, i32, i32) {
    %c0_i32 = arith.constant 0 : i32
    %c0_i32_0 = arith.constant 0 : i32
    return %arg0, %arg1, %c0_i32 : i32, i32, i32
  }
}

</mosaic_0001>

<bundles_post_ra>
// kernel: iwt_forward.1
= control target key start
LH: loop header
LB: loop body
LE: loop exit
PB: predicated region body
PF: predicated region fallthrough
CT: control target
= control target key end

     0   :  { %8 = vsyncpa [#allocation3], 0  ;;  %s873_s0 = inlined_call_operand.hbm [shape: f32[2,4,16,16], index: 0, kind: input, shape index: {}]   ;;  %s874_s1 = inlined_call_operand.vmem [shape: bf16[16,32], index: 1, kind: input, shape index: {}]   ;;  %s875_s2 = inlined_call_operand.vmem [shape: bf16[16,32], index: 2, kind: input, shape index: {}]   ;;  %s876_s3 = inlined_call_operand.vmem [shape: f32[2,16,64], index: 3, kind: output, shape index: {}]  }
   0x1   :  { %10 = vsyncpa [#allocation3 + $0x1], 0  ;;  %s765_s12 = smov 0   ;;  %s767_s13 = smov 0  }
   0x2   :  { %s769_s14 = smov 0   ;;  %s771_s15 = smov 0  }
   0x3   :  { %s773_s16 = smov 0   ;;  %s775_s17 = smov 0  }
   0x4 LB: > { %s563_s18 = sadd.s32 4294967295, %s740_s17   ;;  %s28_s19 = sadd.s32 1, %s736_s16  ;;  %s740_s17 = sphi %s775_s17, %s16_s17   ;;  %s736_s16 = sphi %s773_s16, %s883_s16   ;;  %s732_s15 = sphi %s771_s15, %s882_s15   ;;  %s728_s14 = sphi %s769_s14, %s881_s14   ;;  %s724_s13 = sphi %s767_s13, %s880_s13   ;;  %s720_s12 = sphi %s765_s12, %s879_s12  }
   0x5   : > { %p30_p0 = scmp.ge.s32.totalorder %s28_s19, 2  ;;  %s37_s20 = sadd.s32 1, %s728_s14 }
   0x6   : > { %p44_p1 = scmp.ne.s32.totalorder %s728_s14, %s724_s13  ;;  %p45_p2 = scmp.eq.s32.totalorder %s740_s17, 0 }
   0x7   : > { %s885_s19 = smov (%p30_p0, %s28_s19), 0  ;;  %p50_p4 = scmp.ne.s32.totalorder %s724_s13, %s720_s12 }
   0x8   : > { %p801_p3 = por %p45_p2, %p44_p1  ;;  %s32_s22 = ssub.s32 %s736_s16, %s885_s19 }
   0x9   : > { %p51_p5 = scmp.eq.s32.totalorder %s563_s18, 0  ;;  %p35_p6 = scmp.eq.s32.totalorder %s32_s22, 0 }
   0xa   : > { %p608_p8 = scmp.lt.s32.totalorder %s740_s17, 2  ;;  %s150_s25 = sand.u32 1, %s728_s14  }
   0xb   : > { %p808_p7 = por %p51_p5, %p50_p4  ;;  %s598_s26 = sshll.u32 %s736_s16, 6 }
   0xc   : > { %s814_s24 = scalar_select %p35_p6, %s728_s14, %s37_s20  }
   0xd   : > { %s567_s27 = sshll.u32 %s150_s25, 6  ;;  %s161_s30 = scalar_lea.hbm %s873_s0, %s598_s26 }
   0xe   : > { %s162_s4 = sshll.u32 %s161_s30, 4  ;;  %s154_s5 = scalar_lea.vmem [#allocation2], %s567_s27  ;;  %s163_s4 = int_to_ptr.hbm [resolvable:$true] %s162_s4 }
   0xf   : > { %s164_s6 = sshll.u32 %s154_s5, 4  ;;  %p605_p9 = pnand %p608_p8, %p801_p3  ;;  %s165_s6 = int_to_ptr.vmem [resolvable:$true] %s164_s6 }
  0x10   : > { %p570_p10 = scmp.ge.s32.totalorder %s740_s17, 1  ;;  %p172_p11 = scmp.lt.s32.totalorder %s740_s17, 3 }
  0x11   : > { %s151_s7 = scalar_lea.sflag [#allocation3], %s150_s25  ;;  %s742_s8 = smov 128  }
  0x12   : > { %s743_s9 = smov 8   ;;  %p173_p12 = pnand %p570_p10, %p172_p11 }
  0x13   : > { %607 = dma.hbm_to_vmem [thread:$0]  (!%p605_p9), %s163_s4, 1024, %s165_s6, %s151_s7, %s742_s8, %s742_s8, %s743_s9  }
  0x14   : > { %176 = sbr.rel (%p173_p12) target bundleno = 319 (0x13f), region = 32  ;;  %s178_s10 = sand.u32 (!%p173_p12), 1, %s724_s13  }
  0x15   : > { %s571_s11 = sshll.u32 (!%p173_p12), %s178_s10, 6  ;;  %s179_s12 = scalar_lea.sflag (!%p173_p12), [#allocation3], %s178_s10 }
  0x16   : > { %s182_s18 = scalar_lea.vmem (!%p173_p12), [#allocation2], %s571_s11 }
  0x19   : > { %715 = dma.done.wait (%p808_p7), %s179_s12, 1024  }
  0x1a   : > { %717 = vsyncadd (%p808_p7), %s179_s12, 4294966272  ;;  %v600_v0 = vld [vmem:[%s874_s1] sm:$0xff]  ;;  %v223_v3 = vld [vmem:[%s182_s18 + $0x8] sm:$0xff]  ;;  %vm266_vm0 = vcmask 130048   ;;  %p212_p13 = scmp.lt.s32.totalorder %s732_s15, 1  ;;  %vm360_vm1 = vcmask 261120  }
  0x1b   : > { %v601_v1 = vld [vmem:[%s875_s2] sm:$0xff]  ;;  %v574_v4 = vld [vmem:[%s182_s18 + $0x10] sm:$0xff]  ;;  %v575_v5 = vld [vmem:[%s182_s18 + $0x18] sm:$0xff]  ;;  %299 = vmatpush.bf16.msra.mxu1 %v600_v0  ;;  %277 = vmatpush.bf16.msra.mxu0 %v600_v0  ;;  %vm465_vm2 = vcmask 523520  }
  0x1c   : > { %v222_v2 = vld [vmem:[%s182_s18] sm:$0xff]  ;;  %351 = vmatpush.bf16.msra.mxu3 %v601_v1  ;;  %v577_v7 = vld [vmem:[%s182_s18 + $0x28] sm:$0xff]  ;;  %v578_v8 = vld [vmem:[%s182_s18 + $0x30] sm:$0xff]  ;;  %v236_v10 = vsub.f32 %v223_v3, %v575_v5  ;;  %329 = vmatpush.bf16.msra.mxu2 %v601_v1  ;;  %v234_v14 = vadd.f32 %v575_v5, %v223_v3  ;;  %s887_s15 = smov (!%p212_p13, %s732_s15), 1 }
  0x1d   : > { %v576_v6 = vld [vmem:[%s182_s18 + $0x20] sm:$0xff]  ;;  %v235_v9 = vsub.f32 %v222_v2, %v574_v4  ;;  %v233_v11 = vadd.f32 %v574_v4, %v222_v2  ;;  %v579_v12 = vld [vmem:[%s182_s18 + $0x38] sm:$0xff]  ;;  %s599_s23 = sshll.u32 %s887_s15, 4  ;;  %s744_s15 = smov 32  }
  0x1e   : > { %v239_v13 = vsub.f32 %v576_v6, %v578_v8  ;;  %v237_v15 = vadd.f32 %v578_v8, %v576_v6  ;;  %v240_v16 = vsub.f32 %v577_v7, %v579_v12  ;;  %v238_v17 = vadd.f32 %v579_v12, %v577_v7  ;;  %s849_s28 = scalar_lea.vmem %s876_s3, %s599_s23 }
  0x1f   : > { %380 = vmatpush.bf16.msrb.mxu0 %v600_v0  ;;  %402 = vmatpush.bf16.msrb.mxu1 %v600_v0 }
  0x20   : > { %426 = vmatpush.bf16.msrb.mxu2 %v601_v1  ;;  %448 = vmatpush.bf16.msrb.mxu3 %v601_v1  ;;  %v241_v18 = vsub.f32 %v235_v9, %v239_v13  ;;  %v243_v19 = vsub.f32 %v233_v11, %v237_v15  ;;  %v242_v20 = vsub.f32 %v236_v10, %v240_v16 }
  0x21   : > { %v244_v21 = vsub.f32 %v234_v14, %v238_v17  ;;  %v245_v26 = vadd.f32 %v239_v13, %v235_v9  ;;  %v246_v27 = vadd.f32 %v240_v16, %v236_v10  ;;  %v247_v38 = vadd.f32 %v237_v15, %v233_v11 }
  0x22   : > { %v253_v22 = vpack.c.bf16 %v241_v18, %v241_v18  ;;  %v306_v23 = vpack.c.bf16 %v243_v19, %v243_v19  ;;  %v254_v24 = vpack.c.bf16 %v242_v20, %v242_v20  ;;  %v248_v39 = vadd.f32 %v238_v17, %v234_v14 }
  0x23   : > { %v307_v25 = vpack.c.bf16 %v244_v21, %v244_v21  ;;  %v363_v46 = vpack.c.bf16 %v245_v26, %v245_v26  ;;  %v364_v47 = vpack.c.bf16 %v246_v27, %v246_v27  ;;  %v409_v48 = vpack.c.bf16 %v247_v38, %v247_v38 }
  0x24   : > { %v286_v28 = vunpack.c.l.b16 %v253_v22  ;;  %v338_v29 = vunpack.c.l.b16 %v306_v23  ;;  %v255_v30 = vunpack.c.l.bf16 %v253_v22  ;;  %v308_v31 = vunpack.c.l.bf16 %v306_v23 }
  0x25   : > { %v287_v32 = vunpack.c.l.b16 %v254_v24  ;;  %v339_v33 = vunpack.c.l.b16 %v307_v25  ;;  %v256_v34 = vunpack.c.l.bf16 %v254_v24  ;;  %v309_v35 = vunpack.c.l.bf16 %v307_v25 }
  0x26   : > { %v257_v36 = vsub.f32 %v241_v18, %v255_v30  ;;  %v310_v37 = vsub.f32 %v243_v19, %v308_v31  ;;  %v410_v49 = vpack.c.bf16 %v248_v39, %v248_v39  ;;  %v365_v50 = vunpack.c.l.bf16 %v363_v46 }
  0x27   : > { %v288_v40 = vpack.c.b16 %v287_v32, %v286_v28  ;;  %v340_v41 = vpack.c.b16 %v339_v33, %v338_v29  ;;  %v258_v42 = vsub.f32 %v242_v20, %v256_v34  ;;  %v311_v43 = vsub.f32 %v244_v21, %v309_v35 }
  0x28   : > { %v366_v51 = vunpack.c.l.bf16 %v364_v47  ;;  %v411_v52 = vunpack.c.l.bf16 %v409_v48  ;;  %v412_v53 = vunpack.c.l.bf16 %v410_v49  ;;  %v389_v54 = vunpack.c.l.b16 %v363_v46 }
  0x29   : > { %585 = vmatmul.msk.bf16.vlgmr.msra.gmra.mxu1 %vm266_vm0, %v288_v40  ;;  %591 = vmatmul.msk.bf16.vlgmr.msra.gmra.mxu3 %vm266_vm0, %v340_v41  ;;  %v259_v44 = vpack.c.bf16 %v258_v42, %v257_v36  ;;  %v312_v45 = vpack.c.bf16 %v311_v43, %v310_v37  ;;  %v390_v55 = vunpack.c.l.b16 %v364_v47  ;;  %v435_v56 = vunpack.c.l.b16 %v409_v48 }
  0x2a   : > { %v436_v57 = vunpack.c.l.b16 %v410_v49  ;;  %v367_v58 = vsub.f32 %v245_v26, %v365_v50  ;;  %v368_v59 = vsub.f32 %v246_v27, %v366_v51  ;;  %v413_v60 = vsub.f32 %v247_v38, %v411_v52 }
  0x2b   : > { %584 = vmatmul.msk.bf16.vlgmr.msra.gmra.mxu0 %vm266_vm0, %v259_v44  ;;  %590 = vmatmul.msk.bf16.vlgmr.msra.gmra.mxu2 %vm266_vm0, %v312_v45  ;;  %v414_v61 = vsub.f32 %v248_v39, %v412_v53  ;;  %v391_v62 = vpack.c.b16 %v390_v55, %v389_v54 }
  0x2c   : > { %v437_v63 = vpack.c.b16 %v436_v57, %v435_v56  ;;  %v369_v0 = vpack.c.bf16 %v368_v59, %v367_v58 }
  0x2d   : > { %v415_v1 = vpack.c.bf16 %v414_v61, %v413_v60 }
  0x39   : > { %593 = vmatmul.msk.bf16.vlgmr.msrb.gmra.mxu1 %vm266_vm0, %v391_v62  ;;  %595 = vmatmul.msk.bf16.vlgmr.msrb.gmra.mxu3 %vm266_vm0, %v437_v63 }
  0x3b   : > { %592 = vmatmul.msk.bf16.vlgmr.msrb.gmra.mxu0 %vm266_vm0, %v369_v0  ;;  %594 = vmatmul.msk.bf16.vlgmr.msrb.gmra.mxu2 %vm266_vm0, %v415_v1 }
  0xa6   : > { %v301_v2 = vpop.f32.mrf.mxu1 }
  0xa8   : > { %v279_v3 = vpop.f32.mrf.mxu0 }
  0xa9   : > { %v302_v5 = vadd.f32 %v301_v2, %v279_v3 }
  0xac   : > { %v353_v4 = vpop.f32.mrf.mxu3 }
  0xae   : > { %v331_v6 = vpop.f32.mrf.mxu2  ;;  %v303_v9 = vpop.f32.mrf.mxu1 }
  0xaf   : > { %v354_v7 = vadd.f32 %v353_v4, %v331_v6 }
  0xb0   : > { %v281_v8 = vpop.f32.mrf.mxu0 }
  0xb1   : > { %v358_v10 = vadd.f32 %v354_v7, %v302_v5  ;;  %v304_v13 = vadd.f32 %v303_v9, %v281_v8 }
  0xb3   : > { %361 = vst.msk [vmem:[%s849_s28] sm:$0xff] %vm360_vm1, %v358_v10 }
  0xb4   : > { %v355_v11 = vpop.f32.mrf.mxu3 }
  0xb6   : > { %v333_v12 = vpop.f32.mrf.mxu2  ;;  %v404_v17 = vpop.f32.mrf.mxu1 }
  0xb7   : > { %v356_v14 = vadd.f32 %v355_v11, %v333_v12 }
  0xb8   : > { %v382_v16 = vpop.f32.mrf.mxu0 }
  0xb9   : > { %v359_v15 = vadd.f32 %v356_v14, %v304_v13  ;;  %v405_v19 = vadd.f32 %v404_v17, %v382_v16 }
  0xbb   : > { %362 = vst.msk [vmem:[%s849_s28 + $0x8] sm:$0xff] %vm360_vm1, %v359_v15 }
  0xbc   : > { %v450_v18 = vpop.f32.mrf.mxu3 }
  0xbe   : > { %v428_v20 = vpop.f32.mrf.mxu2  ;;  %v406_v24 = vpop.f32.mrf.mxu1 }
  0xbf   : > { %v451_v21 = vadd.f32 %v450_v18, %v428_v20 }
  0xc0   : > { %v384_v23 = vpop.f32.mrf.mxu0 }
  0xc1   : > { %v455_v22 = vadd.f32 %v451_v21, %v405_v19  ;;  %v407_v27 = vadd.f32 %v406_v24, %v384_v23 }
  0xc3   : > { %459 = vrot.lane.b32.xlu0 %v455_v22, %s744_s15 }
  0xc4   : > { %v452_v25 = vpop.f32.mrf.mxu3 }
  0xc6   : > { %v430_v26 = vpop.f32.mrf.mxu2 }
  0xc7   : > { %v453_v28 = vadd.f32 %v452_v25, %v430_v26 }
  0xc9   : > { %v456_v29 = vadd.f32 %v453_v28, %v407_v27 }
  0xcb   : > { %461 = vrot.lane.b32.xlu0 %v456_v29, %s744_s15 }
 0x135   : > { %v460_v30 = vpop.permute.xlu0 %459 }
 0x136   : > { %466 = vst.msk [vmem:[%s849_s28] sm:$0xff] %vm465_vm2, %v460_v30 }
 0x13d   : > { %v462_v31 = vpop.permute.xlu0 %461 }
 0x13e   : > { %467 = vst.msk [vmem:[%s849_s28 + $0x8] sm:$0xff] %vm465_vm2, %v462_v31 }
 0x13f PF: > { %s16_s17 = sadd.s32 1, %s740_s17   ;;  %s879_s12 = smov %s724_s13 }
 0x140   : > { %p13_p0 = scmp.ge.s32.totalorder %s16_s17, 4   ;;  %s880_s13 = smov %s728_s14 }
 0x141   : > { %s881_s14 = smov %s814_s24  ;;  %s882_s15 = smov %s736_s16 }
 0x142   : > { %s883_s16 = smov %s885_s19  ;;  %15 = sbr.rel (!%p13_p0) target bundleno = 4 (0x4), region = 75 }
 0x147   :  { %498 = vsyncpa [#allocation3], 1 }
 0x148   :  { %500 = vsyncpa [#allocation3 + $0x1], 1 }

</bundles_post_ra>
